<compile_context>
chip_gen: v7x
topology: tpu7x:2x2x1
jax: 0.10.0
libtpu: 0.0.40
codegen_flags: <defaults>
</compile_context>

<pallas_src>
import functools

import jax
import jax.numpy as jnp
from jax.experimental import pallas as pl
from jax.experimental.pallas import tpu as pltpu


_VMEM_LIMIT = 48 * 1024 * 1024    # safe on v5e/v6e (128 MiB) and v7x (64 MiB)
_BLOCK_BYTES = 8 * 1024 * 1024    # ~8 MiB x-tiles: <=32 MiB live after double-
                                  # buffering in/out of pass 2, well under limit


def _choose_spatial_tile(S, C, itemsize):
    """Largest lane tile (multiple of 128) with C*TS*itemsize <= _BLOCK_BYTES."""
    cap = max(128, (_BLOCK_BYTES // (C * itemsize)) // 128 * 128)
    if S <= cap:
        return S                        # one full-extent tile (always legal)
    for ts in range(cap, 0, -128):      # prefer an exact divisor (no masked tail)
        if S % ts == 0:
            return ts
    return cap                          # ragged tail -> masked in pass 1


def _stats_kernel(x_ref, sum_ref, gram_ref, *, S, TS, s_per_split, masked):
    """Accumulate per-channel sums and the C x C Gram over one spatial slice."""
    s = pl.program_id(2)

    @pl.when(s == 0)
    def _():
        sum_ref[...] = jnp.zeros_like(sum_ref)
        gram_ref[...] = jnp.zeros_like(gram_ref)

    xv = x_ref[0].astype(jnp.float32)                        # (C, TS)
    if masked:                                               # ragged spatial tail
        start = (pl.program_id(1) * s_per_split + s) * TS
        lane = jax.lax.broadcasted_iota(jnp.int32, xv.shape, 1)
        xv = jnp.where(start + lane < S, xv, 0.0)

    # Channel sums ride the VPU (free filler next to the MXU Gram below).
    sum_ref[0] += jnp.sum(xv, axis=-1, keepdims=True)        # (C, 1)
    gram_ref[0] += jax.lax.dot_general(                      # x x^T : (C, C)
        xv, xv, (((1,), (1,)), ((), ())),
        preferred_element_type=jnp.float32)


def _apply_kernel(x_ref, a_ref, shift_ref, o_ref):
    """out = A @ x + shift  (centering + whitening + affine in one matmul)."""
    xv = x_ref[0].astype(jnp.float32)                        # (C, TS)
    y = jnp.dot(a_ref[...], xv, preferred_element_type=jnp.float32)
    o_ref[0] = (y + shift_ref[...]).astype(o_ref.dtype)


def _newton_whitening(sigma, T):
    """wm = Sigma^{-1/2} via trace-normalized Newton-Schulz (matches PyTorch)."""
    d = sigma.shape[0]
    r_tr = 1.0 / jnp.trace(sigma)
    sigma_n = sigma * r_tr
    p = jnp.eye(d, dtype=jnp.float32)
    for _ in range(T):
        p = 1.5 * p - 0.5 * (p @ p @ p) @ sigma_n
    return p * jnp.sqrt(r_tr)


@functools.partial(jax.jit, static_argnames=("num_channels", "T", "eps"))
def iter_norm(x, weight, bias, *, num_channels, T=5, eps=1e-5):
    """Training-mode forward of IterNorm (group-wise iterative whitening)."""
    N, C = x.shape[0], x.shape[1]
    S = 1
    for d in x.shape[2:]:
        S *= d
    M = N * S
    xr = x.reshape(N, C, S)

    TS = _choose_spatial_tile(S, C, x.dtype.itemsize)
    num_s = pl.cdiv(S, TS)
    # Parallel spatial split for pass 1 so megacore has work when N is small.
    n_split = 1
    for cand in range(min(8, num_s), 0, -1):
        if num_s % cand == 0:
            n_split = cand
            break
    s_per_split = num_s // n_split

    # ---- pass 1: partial channel sums + C x C Gram -------------------------
    # (Full C x C Gram for simplicity; only the block-diagonal group blocks are
    #  consumed.  For typical C / num_channels the extra MXU work is hidden
    #  under the HBM read of x, so the pass stays memory-bound.)
    part_sums, part_grams = pl.pallas_call(
        functools.partial(_stats_kernel, S=S, TS=TS,
                          s_per_split=s_per_split, masked=(S % TS != 0)),
        out_shape=(jax.ShapeDtypeStruct((N * n_split, C, 1), jnp.float32),
                   jax.ShapeDtypeStruct((N * n_split, C, C), jnp.float32)),
        grid_spec=pltpu.PrefetchScalarGridSpec(
            num_scalar_prefetch=0,
            grid=(N, n_split, s_per_split),
            in_specs=[pl.BlockSpec(
                (1, C, TS), lambda n, p, s: (n, 0, p * s_per_split + s))],
            out_specs=[
                pl.BlockSpec((1, C, 1), lambda n, p, s: (n * n_split + p, 0, 0)),
                pl.BlockSpec((1, C, C), lambda n, p, s: (n * n_split + p, 0, 0)),
            ]),
        compiler_params=pltpu.CompilerParams(
            dimension_semantics=("parallel", "parallel", "arbitrary"),
            vmem_limit_bytes=_VMEM_LIMIT),
    )(xr)

    # ---- glue (tiny): per-group covariance -> Newton-Schulz whitening ------
    sums = jnp.sum(part_sums, axis=0)            # (C, 1)
    gram = jnp.sum(part_grams, axis=0)           # (C, C)
    mean = sums / M                              # (C, 1)

    a_mat = jnp.zeros((C, C), jnp.float32)
    for g0 in range(0, C, num_channels):
        g1 = min(g0 + num_channels, C)           # last group may be smaller
        d = g1 - g0
        mu_g = mean[g0:g1]                                            # (d, 1)
        sigma = (gram[g0:g1, g0:g1] / M - mu_g @ mu_g.T
                 + eps * jnp.eye(d, dtype=jnp.float32))
        a_mat = a_mat.at[g0:g1, g0:g1].set(_newton_whitening(sigma, T))

    # TODO(synk): running_mean / running_wm momentum buffer updates are
    # training-only in-place side effects and are not materialised here
    # (the forward output is unaffected).

    gamma = weight.reshape(C).astype(jnp.float32)
    beta = bias.reshape(C).astype(jnp.float32)
    a_aff = gamma[:, None] * a_mat                                    # (C, C)
    shift = beta[:, None] - a_aff @ mean                              # (C, 1)

    # ---- pass 2: out = A @ x + shift (fused center/whiten/affine) ----------
    # Ragged-tail blocks (if any): out-of-bounds lanes are dropped on writeback.
    out = pl.pallas_call(
        _apply_kernel,
        out_shape=jax.ShapeDtypeStruct((N, C, S), x.dtype),
        grid_spec=pltpu.PrefetchScalarGridSpec(
            num_scalar_prefetch=0,
            grid=(N, num_s),
            in_specs=[pl.BlockSpec((1, C, TS), lambda n, s: (n, 0, s)),
                      pl.BlockSpec((C, C), lambda n, s: (0, 0)),
                      pl.BlockSpec((C, 1), lambda n, s: (0, 0))],
            out_specs=pl.BlockSpec((1, C, TS), lambda n, s: (n, 0, s))),
        compiler_params=pltpu.CompilerParams(
            dimension_semantics=("parallel", "parallel"),
            vmem_limit_bytes=_VMEM_LIMIT),
    )(xr, a_aff, shift)

    return out.reshape(x.shape)


def iter_norm_ref(x, weight, bias, *, num_channels, T=5, eps=1e-5):
    """Pure-JAX reference mirroring the PyTorch IterNorm training forward."""
    N, C = x.shape[0], x.shape[1]
    spatial = x.shape[2:]
    outs = []
    for g0 in range(0, C, num_channels):
        g1 = min(g0 + num_channels, C)
        d = g1 - g0
        xg = x[:, g0:g1]                                    # (N, d, *spatial)
        xf = jnp.moveaxis(xg, 1, 0).reshape(d, -1)          # (d, m)
        m = xf.shape[1]
        mu = xf.mean(-1, keepdims=True)
        xc = xf - mu
        sigma = eps * jnp.eye(d, dtype=jnp.float32) + (xc @ xc.T) / m
        r_tr = 1.0 / jnp.trace(sigma)
        sigma_n = sigma * r_tr
        p = jnp.eye(d, dtype=jnp.float32)
        for _ in range(T):
            p = 1.5 * p - 0.5 * (p @ p @ p) @ sigma_n
        wm = p * jnp.sqrt(r_tr)
        xn = wm @ xc
        outs.append(jnp.moveaxis(xn.reshape(d, N, *spatial), 0, 1))
    x_hat = jnp.concatenate(outs, axis=1)
    return x_hat * weight + bias


def _run_case(key, N, C, H, W, num_channels, T=5, eps=1e-5):
    kx, kw, kb = jax.random.split(key, 3)
    x = jax.random.normal(kx, (N, C, H, W), dtype=jnp.float32)
    # reset_parameters() uses ones/zeros; use nontrivial values to exercise the
    # fused affine path (still deterministic).
    weight = 1.0 + 0.1 * jax.random.normal(kw, (1, C, 1, 1), dtype=jnp.float32)
    bias = 0.1 * jax.random.normal(kb, (1, C, 1, 1), dtype=jnp.float32)

    out = iter_norm(x, weight, bias, num_channels=num_channels, T=T, eps=eps)
    out = jax.block_until_ready(out)

    ref = iter_norm_ref(x, weight, bias, num_channels=num_channels, T=T, eps=eps)
    assert out.shape == x.shape
    max_err = float(jnp.max(jnp.abs(out - ref)))
    assert jnp.allclose(out, ref, atol=1e-3, rtol=1e-3), max_err


if __name__ == "__main__":
    key = jax.random.PRNGKey(0)
    k1, k2 = jax.random.split(key)

    # Small 4-D inputs (IterNorm default dim=4): (N, C, H, W)
    # Case 1: ragged channel groups ([0:4] and [4:6]).
    _run_case(k1, N=2, C=6, H=16, W=16, num_channels=4)
    # Case 2: two equal groups, multi-group path with C a multiple of 8.
    _run_case(k2, N=2, C=16, H=8, W=8, num_channels=8)

    print("KERNEL_OK")
</pallas_src>

<mosaic_0001>
module attributes {stable_mosaic.version = 11 : i64} {
  func.func @_stats_kernel(%arg0: i32, %arg1: i32, %arg2: i32, %arg3: memref<1x6x256xf32, #tpu.memory_space<vmem>>, %arg4: memref<1x6x1xf32, #tpu.memory_space<vmem>>, %arg5: memref<1x6x6xf32, #tpu.memory_space<vmem>>) attributes {dimension_semantics = [#tpu.dimension_semantics<parallel>, #tpu.dimension_semantics<parallel>, #tpu.dimension_semantics<arbitrary>], iteration_bounds = array<i64: 2, 1, 1>, scalar_prefetch = 0 : i64, scratch_operands = 0 : i64, tpu.core_type = #tpu.core_type<tc>, window_params = [{transform_indices = @transform_0, window_bounds = array<i64: 1, 6, 256>}, {transform_indices = @transform_1, window_bounds = array<i64: 1, 6, 1>}, {transform_indices = @transform_2, window_bounds = array<i64: 1, 6, 6>}]} {
    %c0_i32 = arith.constant 0 : i32
    %0 = arith.cmpi eq, %arg2, %c0_i32 : i32
    %1 = arith.extui %0 : i1 to i32
    %c0_i32_0 = arith.constant 0 : i32
    %2 = arith.cmpi ne, %1, %c0_i32_0 : i32
    scf.if %2 {
      %cst_16 = arith.constant 0.000000e+00 : f32
      %20 = vector.broadcast %cst_16 : f32 to vector<1x6x1xf32>
      %c0_17 = arith.constant 0 : index
      %c0_18 = arith.constant 0 : index
      %c0_19 = arith.constant 0 : index
      %21 = vector.load %arg4[%c0_17, %c0_18, %c0_19] : memref<1x6x1xf32, #tpu.memory_space<vmem>>, vector<1x6x1xf32>
      tpu.vector_store %arg4[%c0_17, %c0_18, %c0_19], %20 {strides = array<i32>} : memref<1x6x1xf32, #tpu.memory_space<vmem>>, vector<1x6x1xf32>,
      %cst_20 = arith.constant 0.000000e+00 : f32
      %22 = vector.broadcast %cst_20 : f32 to vector<1x6x6xf32>
      %c0_21 = arith.constant 0 : index
      %c0_22 = arith.constant 0 : index
      %c0_23 = arith.constant 0 : index
      %23 = vector.load %arg5[%c0_21, %c0_22, %c0_23] : memref<1x6x6xf32, #tpu.memory_space<vmem>>, vector<1x6x6xf32>
      tpu.vector_store %arg5[%c0_21, %c0_22, %c0_23], %22 {strides = array<i32>} : memref<1x6x6xf32, #tpu.memory_space<vmem>>, vector<1x6x6xf32>,
    } else {
    }
    %c0 = arith.constant 0 : index
    %c0_1 = arith.constant 0 : index
    %c0_2 = arith.constant 0 : index
    %3 = vector.load %arg3[%c0, %c0_1, %c0_2] : memref<1x6x256xf32, #tpu.memory_space<vmem>>, vector<1x6x256xf32>
    %4 = vector.shape_cast %3 : vector<1x6x256xf32> to vector<6x256xf32>
    %c0_3 = arith.constant 0 : index
    %c0_4 = arith.constant 0 : index
    %c0_5 = arith.constant 0 : index
    %5 = vector.load %arg4[%c0_3, %c0_4, %c0_5] : memref<1x6x1xf32, #tpu.memory_space<vmem>>, vector<1x6x1xf32>
    %6 = vector.shape_cast %5 : vector<1x6x1xf32> to vector<6x1xf32>
    %cst = arith.constant dense<0.000000e+00> : vector<6xf32>
    %7 = vector.multi_reduction <add>, %4, %cst [1] : vector<6x256xf32> to vector<6xf32>
    %8 = vector.shape_cast %7 : vector<6xf32> to vector<6x1xf32>
    %9 = arith.addf %6, %8 : vector<6x1xf32>
    %c0_6 = arith.constant 0 : index
    %c0_7 = arith.constant 0 : index
    %c0_8 = arith.constant 0 : index
    %10 = vector.load %arg4[%c0_6, %c0_7, %c0_8] : memref<1x6x1xf32, #tpu.memory_space<vmem>>, vector<1x6x1xf32>
    %11 = vector.shape_cast %10 : vector<1x6x1xf32> to vector<6x1xf32>
    %12 = vector.shape_cast %9 : vector<6x1xf32> to vector<1x6x1xf32>
    tpu.vector_store %arg4[%c0_6, %c0_7, %c0_8], %12 {strides = array<i32>} : memref<1x6x1xf32, #tpu.memory_space<vmem>>, vector<1x6x1xf32>,
    %c0_9 = arith.constant 0 : index
    %c0_10 = arith.constant 0 : index
    %c0_11 = arith.constant 0 : index
    %13 = vector.load %arg5[%c0_9, %c0_10, %c0_11] : memref<1x6x6xf32, #tpu.memory_space<vmem>>, vector<1x6x6xf32>
    %14 = vector.shape_cast %13 : vector<1x6x6xf32> to vector<6x6xf32>
    %cst_12 = arith.constant dense<0.000000e+00> : vector<6x6xf32>
    %15 = tpu.matmul %4, %4, %cst_12 {dimension_numbers = #tpu.dot_dimension_numbers<[1], [1], [0], [0], [0, 0, 1, 0], [], []>} : vector<6x256xf32>, vector<6x256xf32>, vector<6x6xf32> -> vector<6x6xf32>
    %16 = arith.addf %14, %15 : vector<6x6xf32>
    %c0_13 = arith.constant 0 : index
    %c0_14 = arith.constant 0 : index
    %c0_15 = arith.constant 0 : index
    %17 = vector.load %arg5[%c0_13, %c0_14, %c0_15] : memref<1x6x6xf32, #tpu.memory_space<vmem>>, vector<1x6x6xf32>
    %18 = vector.shape_cast %17 : vector<1x6x6xf32> to vector<6x6xf32>
    %19 = vector.shape_cast %16 : vector<6x6xf32> to vector<1x6x6xf32>
    tpu.vector_store %arg5[%c0_13, %c0_14, %c0_15], %19 {strides = array<i32>} : memref<1x6x6xf32, #tpu.memory_space<vmem>>, vector<1x6x6xf32>,
    return
  }
  func.func @transform_0(%arg0: i32, %arg1: i32, %arg2: i32) -> (i32, i32, i32) {
    %c1_i32 = arith.constant 1 : i32
    %0 = arith.muli %arg1, %c1_i32 : i32
    %1 = arith.addi %0, %arg2 : i32
    %c0_i32 = arith.constant 0 : i32
    %c0_i32_0 = arith.constant 0 : i32
    return %arg0, %c0_i32, %1 : i32, i32, i32
  }
  func.func @transform_1(%arg0: i32, %arg1: i32, %arg2: i32) -> (i32, i32, i32) {
    %c1_i32 = arith.constant 1 : i32
    %0 = arith.muli %arg0, %c1_i32 : i32
    %1 = arith.addi %0, %arg1 : i32
    %c0_i32 = arith.constant 0 : i32
    %c0_i32_0 = arith.constant 0 : i32
    %c0_i32_1 = arith.constant 0 : i32
    return %1, %c0_i32, %c0_i32_0 : i32, i32, i32
  }
  func.func @transform_2(%arg0: i32, %arg1: i32, %arg2: i32) -> (i32, i32, i32) {
    %c1_i32 = arith.constant 1 : i32
    %0 = arith.muli %arg0, %c1_i32 : i32
    %1 = arith.addi %0, %arg1 : i32
    %c0_i32 = arith.constant 0 : i32
    %c0_i32_0 = arith.constant 0 : i32
    %c0_i32_1 = arith.constant 0 : i32
    return %1, %c0_i32, %c0_i32_0 : i32, i32, i32
  }
}

module attributes {stable_mosaic.version = 11 : i64} {
  func.func @_apply_kernel(%arg0: i32, %arg1: i32, %arg2: memref<1x6x256xf32, #tpu.memory_space<vmem>>, %arg3: memref<6x6xf32, #tpu.memory_space<vmem>>, %arg4: memref<6x1xf32, #tpu.memory_space<vmem>>, %arg5: memref<1x6x256xf32, #tpu.memory_space<vmem>>) attributes {dimension_semantics = [#tpu.dimension_semantics<parallel>, #tpu.dimension_semantics<parallel>], iteration_bounds = array<i64: 2, 1>, scalar_prefetch = 0 : i64, scratch_operands = 0 : i64, tpu.core_type = #tpu.core_type<tc>, window_params = [{transform_indices = @transform_0, window_bounds = array<i64: 1, 6, 256>}, {pipeline_mode = #tpu.pipeline_mode<synchronous>, transform_indices = @transform_1, window_bounds = array<i64: 6, 6>}, {pipeline_mode = #tpu.pipeline_mode<synchronous>, transform_indices = @transform_2, window_bounds = array<i64: 6, 1>}, {transform_indices = @transform_3, window_bounds = array<i64: 1, 6, 256>}]} {
    %c0 = arith.constant 0 : index
    %c0_0 = arith.constant 0 : index
    %c0_1 = arith.constant 0 : index
    %0 = vector.load %arg2[%c0, %c0_0, %c0_1] : memref<1x6x256xf32, #tpu.memory_space<vmem>>, vector<1x6x256xf32>
    %1 = vector.shape_cast %0 : vector<1x6x256xf32> to vector<6x256xf32>
    %c0_2 = arith.constant 0 : index
    %c0_3 = arith.constant 0 : index
    %2 = vector.load %arg3[%c0_2, %c0_3] : memref<6x6xf32, #tpu.memory_space<vmem>>, vector<6x6xf32>
    %cst = arith.constant dense<0.000000e+00> : vector<6x256xf32>
    %3 = tpu.matmul %2, %1, %cst {dimension_numbers = #tpu.dot_dimension_numbers<[1], [0], [0], [1], [0, 0, 1, 1], [], []>} : vector<6x6xf32>, vector<6x256xf32>, vector<6x256xf32> -> vector<6x256xf32>
    %c0_4 = arith.constant 0 : index
    %c0_5 = arith.constant 0 : index
    %4 = vector.load %arg4[%c0_4, %c0_5] : memref<6x1xf32, #tpu.memory_space<vmem>>, vector<6x1xf32>
    %5 = vector.broadcast %4 : vector<6x1xf32> to vector<6x256xf32>
    %6 = arith.addf %3, %5 : vector<6x256xf32>
    %c0_6 = arith.constant 0 : index
    %c0_7 = arith.constant 0 : index
    %c0_8 = arith.constant 0 : index
    %7 = vector.load %arg5[%c0_6, %c0_7, %c0_8] : memref<1x6x256xf32, #tpu.memory_space<vmem>>, vector<1x6x256xf32>
    %8 = vector.shape_cast %7 : vector<1x6x256xf32> to vector<6x256xf32>
    %9 = vector.shape_cast %6 : vector<6x256xf32> to vector<1x6x256xf32>
    tpu.vector_store %arg5[%c0_6, %c0_7, %c0_8], %9 {strides = array<i32>} : memref<1x6x256xf32, #tpu.memory_space<vmem>>, vector<1x6x256xf32>,
    return
  }
  func.func @transform_0(%arg0: i32, %arg1: i32) -> (i32, i32, i32) {
    %c0_i32 = arith.constant 0 : i32
    %c0_i32_0 = arith.constant 0 : i32
    return %arg0, %c0_i32, %arg1 : i32, i32, i32
  }
  func.func @transform_1(%arg0: i32, %arg1: i32) -> (i32, i32) {
    %c0_i32 = arith.constant 0 : i32
    %c0_i32_0 = arith.constant 0 : i32
    %c0_i32_1 = arith.constant 0 : i32
    return %c0_i32, %c0_i32_0 : i32, i32
  }
  func.func @transform_2(%arg0: i32, %arg1: i32) -> (i32, i32) {
    %c0_i32 = arith.constant 0 : i32
    %c0_i32_0 = arith.constant 0 : i32
    %c0_i32_1 = arith.constant 0 : i32
    return %c0_i32, %c0_i32_0 : i32, i32
  }
  func.func @transform_3(%arg0: i32, %arg1: i32) -> (i32, i32, i32) {
    %c0_i32 = arith.constant 0 : i32
    %c0_i32_0 = arith.constant 0 : i32
    return %arg0, %c0_i32, %arg1 : i32, i32, i32
  }
}

</mosaic_0001>

<bundles_post_ra>
// kernel: sub.5
= control target key start
LH: loop header
LB: loop body
LE: loop exit
PB: predicated region body
PF: predicated region fallthrough
CT: control target
= control target key end

     0   :  { %s34_s0 = inlined_call_operand.vmem [shape: f32[6,1], index: 0, kind: input, shape index: {}]   ;;  %s35_s1 = inlined_call_operand.vmem [shape: f32[6,1], index: 1, kind: input, shape index: {}]   ;;  %s36_s2 = inlined_call_operand.vmem [shape: f32[6,1], index: 2, kind: output, shape index: {}]  }
   0x1   :  { %v3_v0 = vld [vmem:[%s34_s0] sm:$0x3f] }
   0x2   :  { %v4_v1 = vld [vmem:[%s35_s1] sm:$0x3f] }
   0x3   :  { %v7_v2 = vsub.f32 %v3_v0, %v4_v1 }
   0x5   :  { %9 = vst [vmem:[%s36_s2] sm:$0xff] %v7_v2 }

// kernel: iter_norm.2
= control target key start
LH: loop header
LB: loop body
LE: loop exit
PB: predicated region body
PF: predicated region fallthrough
CT: control target
= control target key end

     0   :  { %s484_s9 = smov 0   ;;  %s486_s10 = smov 0   ;;  %s522_s0 = inlined_call_operand.vmem [shape: f32[2,6,256], index: 0, kind: input, shape index: {}]   ;;  %s523_s1 = inlined_call_operand.vmem [shape: f32[2,6,1], index: 1, kind: output, shape index: {0}]   ;;  %s524_s2 = inlined_call_operand.vmem [shape: f32[2,6,6], index: 2, kind: output, shape index: {1}]  }
   0x1   :  { %s488_s11 = smov 0  }
   0x2 LB: > { %s32_s12 = sadd.s32 1, %s462_s10  ;;  %p411_p0 = scmp.ge.s32.totalorder %s466_s11, 1  ;;  %s466_s11 = sphi %s488_s11, %s13_s11   ;;  %s462_s10 = sphi %s486_s10, %s526_s10   ;;  %s458_s9 = sphi %s484_s9, %s525_s9  }
   0x3   : > { %p34_p1 = scmp.ge.s32.totalorder %s32_s12, 2  ;;  %p149_p2 = scmp.lt.s32.totalorder %s466_s11, 3 }
   0x5   : > { %s528_s12 = smov (%p34_p1, %s32_s12), 0  ;;  %p150_p3 = pnand %p411_p0, %p149_p2 }
   0x6   : > { %p183_p4 = scmp.lt.s32.totalorder (!%p150_p3), %s458_s9, 1  ;;  %vm209_vm0 = vcmask (!%p150_p3), 5120   ;;  %vm216_vm1 = vcmask (!%p150_p3), 1045504   ;;  %v468_v2 = vmov (!%p150_p3), 0.0   ;;  %vm211_vm2 = vcmask (!%p150_p3), 46080  }
   0x7   : > { %153 = sbr.rel (%p150_p3) target bundleno = 237 (0xed), region = 24 }
   0xe   : > { %s530_s9 = smov (!%p183_p4, %s458_s9), 1 }
   0xf   : > { %s418_s13 = sshll.u32 %s530_s9, 4  ;;  %s414_s14 = sshll.u32 %s530_s9, 3 }
  0x10   : > { %s190_s17 = scalar_lea.vmem %s522_s0, %s418_s13  ;;  %s197_s20 = scalar_lea.vmem %s523_s1, %s414_s14 }
  0x11   : > { %v214_v0 = vld [vmem:[%s190_s17 + $0x8] sm:$0x3f]  ;;  %v213_v1 = vld [vmem:[%s190_s17] sm:$0x3f]  ;;  %210 = vst.msk [vmem:[%s197_s20] sm:$0x3f] %vm209_vm0, %v468_v2  ;;  %s203_s23 = scalar_lea.vmem %s524_s2, %s414_s14 }
  0x12   : > { %226 = vmatprep.subr.mxu0 %v214_v0  ;;  %290 = vmatprep.mubr.f32.mxu0 %v214_v0  ;;  %v217_v3 = vsel %vm216_vm1, %v213_v1, 0.0  ;;  %v218_v4 = vsel %vm216_vm1, %v214_v0, 0.0  ;;  %212 = vst.msk [vmem:[%s203_s23] sm:$0x3f] %vm211_vm2, %v468_v2 }
  0x13   : > { %227 = vmatpush1.xpose.msra.mxu0 %v213_v1  ;;  %v219_v5 = vadd.f32 %v218_v4, %v217_v3 }
  0x15   : > { %220 = vadd.xlane.f32.xlu0 %v219_v5 }
  0x16   : > { %291 = vmatmul.mubr.f32.vlgmr.msra.gmra.mrb[0].mxu0 %v213_v1 }
  0x18   : > { %v215_v6 = vld [vmem:[%s197_s20] sm:$0x3f] }
  0x19   : > { %v225_v9 = vld [vmem:[%s203_s23] sm:$0x3f] }
  0xa2   : > { %v221_v7 = vpop.xlane.xlu0 %220 }
  0xa3   : > { %v222_v8 = vadd.f32 %v221_v7, %v215_v6 }
  0xa5   : > { %224 = vst.msk [vmem:[%s197_s20] sm:$0x3f] %vm209_vm0, %v222_v8 }
  0xe9   : > { %v292_v10 = vpop.f32.mrb[0].mxu0 }
  0xea   : > { %v296_v11 = vadd.f32 %v292_v10, %v225_v9  ;;  %v294_v12 = vpop.f32.mrb[1].mxu0 }
  0xec   : > { %298 = vst.msk [vmem:[%s203_s23] sm:$0x3f] %vm211_vm2, %v296_v11 }
  0xed PF: > { %s13_s11 = sadd.s32 1, %s466_s11   ;;  %s525_s9 = smov %s462_s10 }
  0xee   : > { %p10_p5 = scmp.ge.s32.totalorder %s13_s11, 4   ;;  %s526_s10 = smov %s528_s12 }
  0xf0   :  { %12 = sbr.rel (!%p10_p5) target bundleno = 2 (0x2), region = 70 }

// kernel: iter_norm.3
= control target key start
LH: loop header
LB: loop body
LE: loop exit
PB: predicated region body
PF: predicated region fallthrough
CT: control target
= control target key end

     0   :  { %s479_s12 = smov 0   ;;  %s481_s13 = smov 0   ;;  %s518_s0 = inlined_call_operand.vmem [shape: f32[2,6,256], index: 0, kind: input, shape index: {}]   ;;  %s519_s1 = inlined_call_operand.vmem [shape: f32[6,6], index: 1, kind: input, shape index: {}]   ;;  %s520_s2 = inlined_call_operand.vmem [shape: f32[6,1], index: 2, kind: input, shape index: {}]   ;;  %s521_s3 = inlined_call_operand.vmem [shape: f32[2,6,256], index: 3, kind: output, shape index: {}]  }
   0x1   :  { %s483_s14 = smov 0  }
   0x2 LB: > { %s25_s15 = sadd.s32 1, %s451_s13  ;;  %p394_p0 = scmp.ge.s32.totalorder %s455_s14, 1  ;;  %s455_s14 = sphi %s483_s14, %s13_s14   ;;  %s451_s13 = sphi %s481_s13, %s523_s13   ;;  %s447_s12 = sphi %s479_s12, %s522_s12  }
   0x3   : > { %p27_p1 = scmp.ge.s32.totalorder %s25_s15, 2  ;;  %p158_p2 = scmp.lt.s32.totalorder %s455_s14, 3 }
   0x5   : > { %s525_s15 = smov (%p27_p1, %s25_s15), 0  ;;  %p159_p3 = pnand %p394_p0, %p158_p2 }
   0x6   : > { %p191_p4 = scmp.lt.s32.totalorder (!%p159_p3), %s447_s12, 1  ;;  %v457_v0 = vmov (!%p159_p3), 0.0   ;;  %v213_v1 = vld [vmem:[%s520_s2] sm:$0x3f] (!%p159_p3)  ;;  %v458_v2 = vmov (!%p159_p3), 0   ;;  %vm223_vm0 = vcmask (!%p159_p3), 1045504  }
   0x7   : > { %162 = sbr.rel (%p159_p3) target bundleno = 236 (0xec), region = 32  ;;  %294 = vmatprep.mubr.f32.mxu0 (!%p159_p3), %v457_v0  ;;  %432 = vset.pattern.permute.xlu0 (!%p159_p3), %v458_v2  ;;  %v212_v3 = vld [vmem:[%s519_s1] sm:$0x3f] (!%p159_p3)  ;;  %vm219_vm1 = vcmask (!%p159_p3), 48128  }
   0x8   : > { %216 = vperm.xlu0 (!%p159_p3), %432, %v213_v1  }
   0xe   : > { %s527_s12 = smov (!%p191_p4, %s447_s12), 1 }
   0xf   : > { %s404_s18 = sshll.u32 %s527_s12, 4 }
  0x10   : > { %s198_s21 = scalar_lea.vmem %s518_s0, %s404_s18  ;;  %s208_s26 = scalar_lea.vmem %s521_s3, %s404_s18 }
  0x11   : > { %v211_v4 = vld [vmem:[%s198_s21 + $0x8] sm:$0x3f]  ;;  %v210_v5 = vld [vmem:[%s198_s21] sm:$0x3f] }
  0x12   : > { %399 = vmatprep.subr.msk.mxu0 %vm223_vm0, %v211_v4 }
  0x13   : > { %400 = vmatpush1.msk.msra.mxu0 %vm223_vm0, %v210_v5 }
  0x14   : > { %401 = vmatmul.mubr.msk.f32.vlgmr.msra.gmra.mrb[0].mxu0 %vm219_vm1, %v212_v3 }
  0x87   : > { %v217_v6 = vpop.permute.xlu0 %216 }
  0xe7   : > { %v296_v7 = vpop.f32.mrb[0].mxu0 }
  0xe8   : > { %v297_v8 = vadd.f32 %v296_v7, %v217_v6  ;;  %v298_v9 = vpop.f32.mrb[1].mxu0 }
  0xe9   : > { %v299_v10 = vadd.f32 %v298_v9, %v217_v6 }
  0xea   : > { %301 = vst [vmem:[%s208_s26] sm:$0x3f] %v297_v8 }
  0xeb   : > { %302 = vst [vmem:[%s208_s26 + $0x8] sm:$0x3f] %v299_v10 }
  0xec PF: > { %s13_s14 = sadd.s32 1, %s455_s14   ;;  %s522_s12 = smov %s451_s13 }
  0xed   : > { %p10_p5 = scmp.ge.s32.totalorder %s13_s14, 4   ;;  %s523_s13 = smov %s525_s15 }
  0xef   :  { %12 = sbr.rel (!%p10_p5) target bundleno = 2 (0x2), region = 62 }

</bundles_post_ra>
